<compile_context>
chip_gen: v7x
topology: tpu7x:2x2x1
jax: 0.10.0
libtpu: 0.0.40
codegen_flags: <defaults>
</compile_context>

<pallas_src>
import jax
import jax.numpy as jnp
from jax.experimental import pallas as pl
from jax.experimental.pallas import tpu as pltpu


def _repr_net_kernel_t(xT_ref, w1t_ref, b1_ref, w2t_ref, b2_ref, o_ref):
    """Transposed-layout forward.  Per block:
       xT (K, tb), w1t (H, K), b1 (H, 1), w2t (E, H), b2 (E, 1), o (E, tb)."""
    xT = xT_ref[...]                 # (K, tb)
    w1t = w1t_ref[...]               # (H, K)
    k_dim, tb = xT.shape
    hidden = w1t.shape[0]

    # ---- Layer 1: Linear + ReLU, batch on lanes ---------------------------
    # Start from the broadcast bias (hoisted, single lane-splat per sublane
    # tile), then add the contraction.
    h = jnp.broadcast_to(b1_ref[...], (hidden, tb)).astype(jnp.float32)
    if k_dim <= 8:
        # Tiny contraction depth: K rank-1 VPU updates.  In this layout each
        # update is one small w1-column splat (H,1) times a sublane-broadcast
        # row of x^T (1,tb) -- no per-sublane-tile lane broadcasts.
        for k in range(k_dim):
            h = h + w1t[:, k:k + 1] * xT[k:k + 1, :]
    else:
        h = h + jnp.dot(w1t, xT, preferred_element_type=jnp.float32)
    h = jnp.maximum(h, 0.0)          # ReLU

    # ---- Layer 2: Linear + Tanh (MXU + EUP), lane-dense output ------------
    # TODO(synk): optionally cast h / w2t to bf16 here if the accuracy budget
    # allows (cuts MXU passes ~3x); kept f32 to stay within tight tolerances.
    y = jnp.dot(w2t_ref[...], h, preferred_element_type=jnp.float32)
    o_ref[...] = jnp.tanh(y + b2_ref[...]).astype(o_ref.dtype)


def representation_network_t(xT, w1, b1, w2, b2, *, tile_b=None):
    """Core Pallas forward in transposed layout: xT (K, B) -> y^T (E, B).

    w1: (K, H), b1: (1, H) or (H,), w2: (H, E), b2: (1, E) or (E,), all f32
    (weights stored as (in, out), i.e. transposed torch weights).
    """
    K, B = xT.shape
    H = w1.shape[1]
    E = w2.shape[1]

    # Kernel-side parameter layout (tiny arrays; transposed once by XLA).
    w1t = w1.T                       # (H, K)
    w2t = w2.T                       # (E, H)
    b1c = jnp.reshape(b1, (H, 1))
    b2c = jnp.reshape(b2, (E, 1))

    cost = pl.CostEstimate(
        flops=int(2 * B * (K * H + H * E)),
        transcendentals=int(B * E),                           # tanh
        bytes_accessed=int(4 * (B * K + K * H + H + H * E + E + B * E)),
    )

    if B <= 1024:
        # Small batch: single gridless call, whole operands resident in VMEM
        # (a few tens of KiB).  No grid-loop / double-buffer overhead.
        # TODO(synk): for B of only a few rows the pallas_call launch cost
        # dominates; batch requests upstream rather than tuning the kernel.
        vmem = pl.BlockSpec(memory_space=pltpu.MemorySpace.VMEM)
        return pl.pallas_call(
            _repr_net_kernel_t,
            out_shape=jax.ShapeDtypeStruct((E, B), jnp.float32),
            in_specs=[vmem, vmem, vmem, vmem, vmem],
            out_specs=vmem,
            cost_estimate=cost,
        )(xT, w1t, b1c, w2t, b2c)

    # Batch-tiled, pipelined path.  Batch is the lane axis; every block is
    # lane-dense.  Weights/biases stay VMEM-resident via constant index maps.
    if tile_b is None:
        # Aim for ~8 grid steps (>= ~4 per TensorCore on v7x) and amortize the
        # ~0.35 us per-step overhead; clamp to [512, 4096] lanes (multiple of
        # 128).  Per-step VMEM is only a few hundred KiB even double-buffered,
        # far below every generation's scoped-VMEM default, so no
        # vmem_limit_bytes override is needed.
        tile_b = max(512, min(4096, 128 * (B // (8 * 128))))
    n_tiles = pl.cdiv(B, tile_b)
    B_pad = n_tiles * tile_b
    xTp = jnp.pad(xT, ((0, 0), (0, B_pad - B))) if B_pad != B else xT

    outT = pl.pallas_call(
        _repr_net_kernel_t,
        out_shape=jax.ShapeDtypeStruct((E, B_pad), jnp.float32),
        grid=(n_tiles,),
        in_specs=[
            pl.BlockSpec((K, tile_b), lambda i: (0, i)),   # x^T batch tile
            pl.BlockSpec((H, K), lambda i: (0, 0)),        # w1^T (resident)
            pl.BlockSpec((H, 1), lambda i: (0, 0)),        # b1
            pl.BlockSpec((E, H), lambda i: (0, 0)),        # w2^T (resident)
            pl.BlockSpec((E, 1), lambda i: (0, 0)),        # b2
        ],
        out_specs=pl.BlockSpec((E, tile_b), lambda i: (0, i)),
        compiler_params=pltpu.CompilerParams(
            dimension_semantics=("parallel",)),            # megacore on v7x
        cost_estimate=cost,
    )(xTp, w1t, b1c, w2t, b2c)

    return outT if B_pad == B else outT[:, :B]


def representation_network(x, w1, b1, w2, b2, *, tile_b=None):
    """Torch-compatible interface: x (B, K) -> (B, E).

    The two thin transposes (16 B/row in, 32 B/row out) are plain XLA copies;
    callers that can keep activations in (feature, batch) layout should use
    representation_network_t directly and skip them entirely.
    """
    yT = representation_network_t(jnp.transpose(x), w1, b1, w2, b2, tile_b=tile_b)
    return jnp.transpose(yT)


def init_params(key, input_size, hidden_neurons, embedding_size):
    """Deterministic init mimicking torch.nn.Linear default U(-1/sqrt(fan_in), 1/sqrt(fan_in))."""
    k1, k2, k3, k4 = jax.random.split(key, 4)
    lim1 = 1.0 / jnp.sqrt(jnp.float32(input_size))
    lim2 = 1.0 / jnp.sqrt(jnp.float32(hidden_neurons))
    # Stored as (in, out) so the math is x @ W (transposed torch weight).
    w1 = jax.random.uniform(k1, (input_size, hidden_neurons), jnp.float32, -lim1, lim1)
    b1 = jax.random.uniform(k2, (1, hidden_neurons), jnp.float32, -lim1, lim1)
    w2 = jax.random.uniform(k3, (hidden_neurons, embedding_size), jnp.float32, -lim2, lim2)
    b2 = jax.random.uniform(k4, (1, embedding_size), jnp.float32, -lim2, lim2)
    return w1, b1, w2, b2


def reference_forward(x, w1, b1, w2, b2):
    hi = jax.lax.Precision.HIGHEST
    h = jnp.maximum(jnp.dot(x, w1, precision=hi) + b1, 0.0)
    return jnp.tanh(jnp.dot(h, w2, precision=hi) + b2)


if __name__ == "__main__":
    # Small shapes consistent with the module: CartPole state dim = 4.
    batch = 2
    input_size = 4
    hidden_neurons = 32
    embedding_size = 8

    key = jax.random.PRNGKey(0)
    kx, kp, kb1, kb2 = jax.random.split(key, 4)
    x = jax.random.normal(kx, (batch, input_size), jnp.float32)
    w1, b1, w2, b2 = init_params(kp, input_size, hidden_neurons, embedding_size)

    # Small-batch (gridless) path.
    out = jax.block_until_ready(representation_network(x, w1, b1, w2, b2))
    ref = reference_forward(x, w1, b1, w2, b2)
    assert out.shape == (batch, embedding_size)
    assert jnp.allclose(out, ref, atol=1e-4, rtol=1e-4), "small-batch mismatch vs reference"

    # Larger batch, exact tile multiple (tiled, parallel path).
    xb = jax.random.normal(kb1, (4096, input_size), jnp.float32)
    out_b = jax.block_until_ready(representation_network(xb, w1, b1, w2, b2))
    ref_b = reference_forward(xb, w1, b1, w2, b2)
    assert out_b.shape == (4096, embedding_size)
    assert jnp.allclose(out_b, ref_b, atol=1e-4, rtol=1e-4), "tiled-batch mismatch vs reference"

    # Ragged batch (exercises the pad-to-tile-multiple path, no VMEM blowup).
    xr = jax.random.normal(kb2, (3000, input_size), jnp.float32)
    out_r = jax.block_until_ready(representation_network(xr, w1, b1, w2, b2))
    ref_r = reference_forward(xr, w1, b1, w2, b2)
    assert out_r.shape == (3000, embedding_size)
    assert jnp.allclose(out_r, ref_r, atol=1e-4, rtol=1e-4), "ragged-batch mismatch vs reference"

    print("KERNEL_OK")
</pallas_src>

<mosaic_0001>
module attributes {stable_mosaic.version = 11 : i64} {
  func.func @_repr_net_kernel_t(%arg0: memref<4x2xf32, #tpu.memory_space<vmem>>, %arg1: memref<32x4xf32, #tpu.memory_space<vmem>>, %arg2: memref<32x1xf32, #tpu.memory_space<vmem>>, %arg3: memref<8x32xf32, #tpu.memory_space<vmem>>, %arg4: memref<8x1xf32, #tpu.memory_space<vmem>>, %arg5: memref<8x2xf32, #tpu.memory_space<vmem>>) attributes {dimension_semantics = [], scalar_prefetch = 0 : i64, scratch_operands = 0 : i64, tpu.core_type = #tpu.core_type<tc>} {
    %c0 = arith.constant 0 : index
    %c0_0 = arith.constant 0 : index
    %0 = vector.load %arg0[%c0, %c0_0] : memref<4x2xf32, #tpu.memory_space<vmem>>, vector<4x2xf32>
    %c0_1 = arith.constant 0 : index
    %c0_2 = arith.constant 0 : index
    %1 = vector.load %arg1[%c0_1, %c0_2] : memref<32x4xf32, #tpu.memory_space<vmem>>, vector<32x4xf32>
    %c0_3 = arith.constant 0 : index
    %c0_4 = arith.constant 0 : index
    %2 = vector.load %arg2[%c0_3, %c0_4] : memref<32x1xf32, #tpu.memory_space<vmem>>, vector<32x1xf32>
    %3 = vector.shape_cast %2 : vector<32x1xf32> to vector<32x1xf32>
    %4 = vector.broadcast %3 : vector<32x1xf32> to vector<32x2xf32>
    %5 = vector.extract_strided_slice %1 {offsets = [0, 0], sizes = [32, 1], strides = [1, 1]} : vector<32x4xf32> to vector<32x1xf32>
    %6 = vector.extract_strided_slice %0 {offsets = [0, 0], sizes = [1, 2], strides = [1, 1]} : vector<4x2xf32> to vector<1x2xf32>
    %7 = vector.broadcast %5 : vector<32x1xf32> to vector<32x2xf32>
    %8 = vector.broadcast %6 : vector<1x2xf32> to vector<32x2xf32>
    %9 = arith.mulf %7, %8 : vector<32x2xf32>
    %10 = arith.addf %4, %9 : vector<32x2xf32>
    %11 = vector.extract_strided_slice %1 {offsets = [0, 1], sizes = [32, 1], strides = [1, 1]} : vector<32x4xf32> to vector<32x1xf32>
    %12 = vector.extract_strided_slice %0 {offsets = [1, 0], sizes = [1, 2], strides = [1, 1]} : vector<4x2xf32> to vector<1x2xf32>
    %13 = vector.broadcast %11 : vector<32x1xf32> to vector<32x2xf32>
    %14 = vector.broadcast %12 : vector<1x2xf32> to vector<32x2xf32>
    %15 = arith.mulf %13, %14 : vector<32x2xf32>
    %16 = arith.addf %10, %15 : vector<32x2xf32>
    %17 = vector.extract_strided_slice %1 {offsets = [0, 2], sizes = [32, 1], strides = [1, 1]} : vector<32x4xf32> to vector<32x1xf32>
    %18 = vector.extract_strided_slice %0 {offsets = [2, 0], sizes = [1, 2], strides = [1, 1]} : vector<4x2xf32> to vector<1x2xf32>
    %19 = vector.broadcast %17 : vector<32x1xf32> to vector<32x2xf32>
    %20 = vector.broadcast %18 : vector<1x2xf32> to vector<32x2xf32>
    %21 = arith.mulf %19, %20 : vector<32x2xf32>
    %22 = arith.addf %16, %21 : vector<32x2xf32>
    %23 = vector.extract_strided_slice %1 {offsets = [0, 3], sizes = [32, 1], strides = [1, 1]} : vector<32x4xf32> to vector<32x1xf32>
    %24 = vector.extract_strided_slice %0 {offsets = [3, 0], sizes = [1, 2], strides = [1, 1]} : vector<4x2xf32> to vector<1x2xf32>
    %25 = vector.broadcast %23 : vector<32x1xf32> to vector<32x2xf32>
    %26 = vector.broadcast %24 : vector<1x2xf32> to vector<32x2xf32>
    %27 = arith.mulf %25, %26 : vector<32x2xf32>
    %28 = arith.addf %22, %27 : vector<32x2xf32>
    %cst = arith.constant 0.000000e+00 : f32
    %29 = vector.broadcast %cst : f32 to vector<32x2xf32>
    %30 = arith.maximumf %28, %29 : vector<32x2xf32>
    %c0_5 = arith.constant 0 : index
    %c0_6 = arith.constant 0 : index
    %31 = vector.load %arg3[%c0_5, %c0_6] : memref<8x32xf32, #tpu.memory_space<vmem>>, vector<8x32xf32>
    %cst_7 = arith.constant dense<0.000000e+00> : vector<8x2xf32>
    %32 = tpu.matmul %31, %30, %cst_7 {dimension_numbers = #tpu.dot_dimension_numbers<[1], [0], [0], [1], [0, 0, 1, 1], [], []>} : vector<8x32xf32>, vector<32x2xf32>, vector<8x2xf32> -> vector<8x2xf32>
    %c0_8 = arith.constant 0 : index
    %c0_9 = arith.constant 0 : index
    %33 = vector.load %arg4[%c0_8, %c0_9] : memref<8x1xf32, #tpu.memory_space<vmem>>, vector<8x1xf32>
    %34 = vector.broadcast %33 : vector<8x1xf32> to vector<8x2xf32>
    %35 = arith.addf %32, %34 : vector<8x2xf32>
    %36 = math.tanh %35 : vector<8x2xf32>
    %c0_10 = arith.constant 0 : index
    %c0_11 = arith.constant 0 : index
    %37 = vector.load %arg5[%c0_10, %c0_11] : memref<8x2xf32, #tpu.memory_space<vmem>>, vector<8x2xf32>
    tpu.vector_store %arg5[%c0_10, %c0_11], %36 {strides = array<i32>} : memref<8x2xf32, #tpu.memory_space<vmem>>, vector<8x2xf32>,
    return
  }
}

</mosaic_0001>

<bundles_post_ra>
// kernel: tpu_custom_call.1
= control target key start
LH: loop header
LB: loop body
LE: loop exit
PB: predicated region body
PF: predicated region fallthrough
CT: control target
= control target key end

     0   :  { %v302_v0 = vmov 0   ;;  %v303_v6 = vmov 1   ;;  %v304_v9 = vmov 2   ;;  %v305_v10 = vmov 3   ;;  %s377_s2 = inlined_call_operand.vmem [shape: f32[32,1], index: 2, kind: input, shape index: {}]   ;;  %s378_s1 = inlined_call_operand.vmem [shape: f32[32,4], index: 1, kind: input, shape index: {}]   ;;  %s379_s4 = inlined_call_operand.vmem [shape: f32[8,1], index: 4, kind: input, shape index: {}]   ;;  %s380_s0 = inlined_call_operand.vmem [shape: f32[4,2], index: 0, kind: input, shape index: {}]   ;;  %s381_s3 = inlined_call_operand.vmem [shape: f32[8,32], index: 3, kind: input, shape index: {}]   ;;  %s382_s5 = inlined_call_operand.vmem [shape: f32[8,2], index: 5, kind: output, shape index: {}]  }
   0x1   :  { %288 = vset.pattern.permute.xlu1 %v302_v0  ;;  %287 = vset.pattern.permute.xlu0 %v302_v0  ;;  %v25_v1 = vld [vmem:[%s377_s2] sm:$0xff]  ;;  %v26_v3 = vld [vmem:[%s377_s2 + $0x8] sm:$0xff]  ;;  %v24_v5 = vld [vmem:[%s378_s1 + $0x18] sm:$0xff]  ;;  %v306_v12 = vmov 0.0|0.0   ;;  %vm307_vm0 = vmmov 0   ;;  %v308_v13 = vmov 0.0   ;;  %v69_v21 = vlaneseq }
   0x2   :  { %v21_v2 = vld [vmem:[%s378_s1] sm:$0xff]  ;;  %31 = vperm.xlu1 %288, %v25_v1   ;;  %v22_v4 = vld [vmem:[%s378_s1 + $0x8] sm:$0xff]  ;;  %v27_v7 = vld [vmem:[%s377_s2 + $0x10] sm:$0xff]  ;;  %274 = vmatprep.subr.bf16.mxu0 %v306_v12  ;;  %vm176_vm1 = vcmask 261120   ;;  %vm251_vm2 = vcmask 15360  }
   0x3   :  { %51 = vperm.xlu0 %287, %v21_v2   ;;  %v23_v8 = vld [vmem:[%s378_s1 + $0x10] sm:$0xff]  ;;  %v28_v11 = vld [vmem:[%s377_s2 + $0x18] sm:$0xff]  ;;  %271 = vmatprep.mubr.msk.f32.mxu0 %vm307_vm0, %v308_v13  ;;  %v170_v14 = vld [vmem:[%s379_s4] sm:$0xff]  ;;  %v70_v24 = vshrl.u32 %v69_v21, 7 }
   0x4   :  { %v20_v29 = vld [vmem:[%s380_s0] sm:$0xf] }
   0x5   :  { %v71_v27 = vsub.s32 0, %v70_v24  ;;  %v99_v28 = vsub.s32 1, %v70_v24  ;;  %v127_v33 = vsub.s32 2, %v70_v24  ;;  %v155_v36 = vsub.s32 3, %v70_v24 }
   0x6   :  { %36 = vperm.xlu1 %288, %v26_v3  }
   0x7   :  { %56 = vperm.xlu0 %287, %v22_v4   ;;  %v72_v31 = vrot.slane %v20_v29, %v71_v27  ;;  %v100_v32 = vrot.slane %v20_v29, %v99_v28  ;;  %v128_v40 = vrot.slane %v20_v29, %v127_v33  ;;  %v156_v44 = vrot.slane %v20_v29, %v155_v36 }
   0xa   :  { %289 = vset.pattern.permute.xlu1 %v303_v6 }
   0xb   :  { %66 = vperm.xlu0 %287, %v24_v5   ;;  %86 = vperm.xlu1 %289, %v22_v4  }
   0xf   :  { %41 = vperm.xlu0 %287, %v27_v7   ;;  %290 = vset.pattern.permute.xlu1 %v302_v0 }
  0x10   :  { %61 = vperm.xlu1 %290, %v23_v8  }
  0x13   :  { %292 = vset.pattern.permute.xlu0 %v303_v6 }
  0x14   :  { %82 = vperm.xlu0 %292, %v21_v2   ;;  %291 = vset.pattern.permute.xlu1 %v304_v9 }
  0x15   :  { %110 = vperm.xlu1 %291, %v21_v2  }
  0x18   :  { %90 = vperm.xlu0 %292, %v23_v8  }
  0x19   :  { %114 = vperm.xlu1 %291, %v22_v4  }
  0x1c   :  { %296 = vset.pattern.permute.xlu0 %v305_v10 }
  0x1d   :  { %142 = vperm.xlu0 %296, %v22_v4   ;;  %293 = vset.pattern.permute.xlu1 %v302_v0 }
  0x1e   :  { %46 = vperm.xlu1 %293, %v28_v11  }
  0x21   :  { %146 = vperm.xlu0 %296, %v23_v8  }
  0x22   :  { %294 = vset.pattern.permute.xlu1 %v303_v6 }
  0x23   :  { %94 = vperm.xlu1 %294, %v24_v5  }
  0x25   :  { %299 = vset.pattern.permute.xlu0 %v302_v0 }
  0x26   :  { %173 = vperm.xlu0 %299, %v170_v14  }
  0x27   :  { %295 = vset.pattern.permute.xlu1 %v305_v10 }
  0x28   :  { %138 = vperm.xlu1 %295, %v21_v2  }
  0x2c   :  { %297 = vset.pattern.permute.xlu1 %v304_v9 }
  0x2d   :  { %118 = vperm.xlu1 %297, %v23_v8  }
  0x31   :  { %122 = vperm.xlu1 %297, %v24_v5  }
  0x35   :  { %298 = vset.pattern.permute.xlu1 %v305_v10 }
  0x36   :  { %150 = vperm.xlu1 %298, %v24_v5  }
  0x81   :  { %v32_v15 = vpop.permute.xlu1 %31 }
  0x82   :  { %v52_v16 = vpop.permute.xlu0 %51 }
  0x83   :  { %v73_v38 = vmul.f32 %v72_v31, %v52_v16 }
  0x85   :  { %v37_v17 = vpop.permute.xlu1 %36  ;;  %v77_v46 = vadd.f32 %v73_v38, %v32_v15 }
  0x86   :  { %v57_v18 = vpop.permute.xlu0 %56 }
  0x87   :  { %v74_v35 = vmul.f32 %v72_v31, %v57_v18 }
  0x89   :  { %v78_v41 = vadd.f32 %v74_v35, %v37_v17 }
  0x8a   :  { %v67_v19 = vpop.permute.xlu0 %66  ;;  %v87_v20 = vpop.permute.xlu1 %86 }
  0x8b   :  { %v102_v39 = vmul.f32 %v100_v32, %v87_v20  ;;  %v76_v3 = vmul.f32 %v72_v31, %v67_v19  ;;  %v169_v19 = vld [vmem:[%s381_s3] sm:$0xff] }
  0x8d   :  { %v106_v47 = vadd.f32 %v102_v39, %v78_v41 }
  0x8e   :  { %v42_v22 = vpop.permute.xlu0 %41 }
  0x8f   :  { %v62_v23 = vpop.permute.xlu1 %61 }
  0x90   :  { %v75_v57 = vmul.f32 %v72_v31, %v62_v23 }
  0x92   :  { %v79_v63 = vadd.f32 %v75_v57, %v42_v22 }
  0x93   :  { %v83_v26 = vpop.permute.xlu0 %82 }
  0x94   :  { %v111_v25 = vpop.permute.xlu1 %110  ;;  %v101_v42 = vmul.f32 %v100_v32, %v83_v26 }
  0x95   :  { %v129_v50 = vmul.f32 %v128_v40, %v111_v25 }
  0x96   :  { %v105_v49 = vadd.f32 %v101_v42, %v77_v46 }
  0x97   :  { %v91_v34 = vpop.permute.xlu0 %90 }
  0x98   :  { %v115_v30 = vpop.permute.xlu1 %114  ;;  %v133_v54 = vadd.f32 %v129_v50, %v105_v49  ;;  %v103_v59 = vmul.f32 %v100_v32, %v91_v34 }
  0x99   :  { %v130_v43 = vmul.f32 %v128_v40, %v115_v30 }
  0x9a   :  { %v107_v4 = vadd.f32 %v103_v59, %v79_v63 }
  0x9b   :  { %v134_v51 = vadd.f32 %v130_v43, %v106_v47 }
  0x9c   :  { %v143_v45 = vpop.permute.xlu0 %142 }
  0x9d   :  { %v47_v37 = vpop.permute.xlu1 %46  ;;  %v158_v52 = vmul.f32 %v156_v44, %v143_v45 }
  0x9e   :  { %v80_v7 = vadd.f32 %v76_v3, %v47_v37 }
  0x9f   :  { %v162_v55 = vadd.f32 %v158_v52, %v134_v51 }
  0xa0   :  { %v147_v2 = vpop.permute.xlu0 %146 }
  0xa1   :  { %v166_v60 = vmax.f32 %v162_v55, 0.0  ;;  %v159_v9 = vmul.f32 %v156_v44, %v147_v2 }
  0xa2   :  { %v95_v48 = vpop.permute.xlu1 %94 }
  0xa3   :  { %v104_v5 = vmul.f32 %v100_v32, %v95_v48 }
  0xa5   :  { %v108_v11 = vadd.f32 %v104_v5, %v80_v7 }
  0xa7   :  { %v139_v53 = vpop.permute.xlu1 %138 }
  0xa8   :  { %v157_v56 = vmul.f32 %v156_v44, %v139_v53 }
  0xaa   :  { %v161_v58 = vadd.f32 %v157_v56, %v133_v54 }
  0xac   :  { %v165_v61 = vmax.f32 %v161_v58, 0.0  ;;  %v119_v62 = vpop.permute.xlu1 %118 }
  0xad   :  { %v131_v0 = vmul.f32 %v128_v40, %v119_v62 }
  0xae   :  { %v275_v1 = vpack.c.bf16 %v166_v60, %v165_v61 }
  0xaf   :  { %v135_v8 = vadd.f32 %v131_v0, %v107_v4 }
  0xb0   :  { %v123_v6 = vpop.permute.xlu1 %122  ;;  %276 = vmatpush3.bf16.msra.mxu0 %v275_v1 }
  0xb1   :  { %277 = vmatprep.subr.bf16.mxu0 %v306_v12  ;;  %v132_v10 = vmul.f32 %v128_v40, %v123_v6  ;;  %v163_v14 = vadd.f32 %v159_v9, %v135_v8  ;;  %v174_v12 = vpop.permute.xlu0 %173 }
  0xb3   :  { %v136_v15 = vadd.f32 %v132_v10, %v108_v11  ;;  %v167_v18 = vmax.f32 %v163_v14, 0.0 }
  0xb5   :  { %v151_v13 = vpop.permute.xlu1 %150 }
  0xb6   :  { %v160_v16 = vmul.f32 %v156_v44, %v151_v13 }
  0xb8   :  { %v164_v17 = vadd.f32 %v160_v16, %v136_v15 }
  0xba   :  { %v168_v20 = vmax.f32 %v164_v17, 0.0 }
  0xbc   :  { %v278_v21 = vpack.c.bf16 %v168_v20, %v167_v18 }
  0xbe   :  { %279 = vmatpush3.bf16.msra.mxu0 %v278_v21 }
  0xc1   :  { %272 = vmatmul.mubr.msk.f32.vlgmr.msra.gmra.mrb[0].mxu0 %vm176_vm1, %v169_v19 }
 0x194   :  { %v246_v22 = vpop.f32.mrb[0].mxu0 }
 0x195   :  { %v247_v23 = vadd.f32 %v246_v22, %v174_v12  ;;  %v273_v24 = vpop.f32.mrb[1].mxu0 }
 0x197   :  { %300 = vtanh.f32 %v247_v23 }
 0x1a1   :  { %v301_v25 = vpop.eup %300 }
 0x1a2   :  { %252 = vst.msk [vmem:[%s382_s5] sm:$0xff] %vm251_vm2, %v301_v25 }

</bundles_post_ra>
